<compile_context>
chip_gen: v6e
topology: v6e:2x2x1
jax: 0.10.0
libtpu: 0.0.40
codegen_flags: <defaults>
</compile_context>

<pallas_src>
import jax
import jax.numpy as jnp
from jax.experimental import pallas as pl
from jax.experimental.pallas import tpu as pltpu


# ---------------------------------------------------------------------------
# Pallas kernel
# ---------------------------------------------------------------------------

def _dwconv_kernel(x_ref, w_ref, b_ref, o_ref):
    # Depthwise 1x1 Conv1d == per-channel scale + shift.  Upcast to f32 for the FMA
    # (free under the memory bound, required on v5e for bf16 inputs), store in o.dtype.
    x = x_ref[...].astype(jnp.float32)
    o_ref[...] = (x * w_ref[...] + b_ref[...]).astype(o_ref.dtype)


def _round_up(a, b):
    return ((a + b - 1) // b) * b


def dwconv(x, weight, bias, *, target_tile_bytes=2 << 20):
    """DWConv.forward.

    x:      [B, N, C]  (channels-last, as handed to DWConv.forward).  Any float dtype.
    weight: Conv1d weight, shape [C] (or [C,1,1], flattened here).
    bias:   [C].
    Returns [B, N, C] in x.dtype.
    """
    B, N, C = x.shape
    M = B * N
    total = M * C
    dtype = x.dtype
    itemsize = jnp.dtype(dtype).itemsize

    w = jnp.asarray(weight, jnp.float32).reshape(-1)   # [C]
    b = jnp.asarray(bias, jnp.float32).reshape(-1)     # [C]

    # ---- choose a lane-dense 2D view (free reshapes of a contiguous array) ----
    if C % 128 == 0:
        # Channels already fill whole lanes.
        rows, lanes = M, C
        w_row, b_row = w.reshape(1, C), b.reshape(1, C)
    elif (128 % C == 0) and (total % 128 == 0):
        # Small C: flatten so every 128-lane vreg is fully used; channel of lane l is l % C,
        # independent of the row, so weight/bias tile to a single (1, 128) row.
        lanes = 128
        rows = total // 128
        rep = 128 // C
        w_row, b_row = jnp.tile(w, rep).reshape(1, lanes), jnp.tile(b, rep).reshape(1, lanes)
    else:
        # Fallback: (M, C) view; Pallas masks the partial lanes.  Still correct.
        rows, lanes = M, C
        w_row, b_row = w.reshape(1, C), b.reshape(1, C)

    xf = x.reshape(rows, lanes)

    # ---- row tiling: ~target_tile_bytes per x tile, sublane-aligned, grid >= 2 if possible ----
    rows_r8 = _round_up(rows, 8)
    tile_r = max(8, (target_tile_bytes // max(1, lanes * itemsize)) // 8 * 8)
    tile_r = min(tile_r, rows_r8)
    if rows_r8 > 8 and pl.cdiv(rows, tile_r) < 2:
        # Keep at least 2 grid steps so v7x's two TensorCores both get work.
        tile_r = max(8, _round_up(pl.cdiv(rows_r8, 2), 8))
    grid = pl.cdiv(rows, tile_r)   # ragged last block handled by Pallas masking (no pad/slice)

    out = pl.pallas_call(
        _dwconv_kernel,
        out_shape=jax.ShapeDtypeStruct((rows, lanes), dtype),
        grid_spec=pltpu.PrefetchScalarGridSpec(
            num_scalar_prefetch=0,
            grid=(grid,),
            in_specs=[
                pl.BlockSpec((tile_r, lanes), lambda i: (i, 0)),   # x tile
                pl.BlockSpec((1, lanes), lambda i: (0, 0)),        # weight row (broadcast)
                pl.BlockSpec((1, lanes), lambda i: (0, 0)),        # bias row   (broadcast)
            ],
            out_specs=pl.BlockSpec((tile_r, lanes), lambda i: (i, 0)),
        ),
        compiler_params=pltpu.CompilerParams(
            dimension_semantics=("parallel",)),
        cost_estimate=pl.CostEstimate(
            flops=2 * total,
            transcendentals=0,
            bytes_accessed=2 * total * itemsize + 2 * C * 4),
    )(xf, w_row, b_row)
    return out.reshape(B, N, C)


def dwconv_forward(x, N_unused, weight, bias):
    """Signature-compatible with DWConv.forward(x, N); N is shadowed/unused in the
    PyTorch reference, so it is ignored here as well."""
    return dwconv(x, weight, bias)


# ---------------------------------------------------------------------------
# Main
# ---------------------------------------------------------------------------

if __name__ == "__main__":
    key = jax.random.PRNGKey(0)
    kx, kw, kb = jax.random.split(key, 3)

    # Primary test: small shapes consistent with the module, lane-dense path (C divides 128).
    B, N, C = 2, 64, 32
    x = jax.random.normal(kx, (B, N, C), jnp.float32)
    weight = jax.random.normal(kw, (C,), jnp.float32)   # Conv1d weight [C,1,1] squeezed
    bias = jax.random.normal(kb, (C,), jnp.float32)

    fwd = jax.jit(dwconv)
    y = fwd(x, weight, bias)
    jax.block_until_ready(y)

    ref = x * weight[None, None, :] + bias[None, None, :]
    assert y.shape == (B, N, C)
    assert bool(jnp.all(jnp.isfinite(y)))
    assert bool(jnp.allclose(y, ref, atol=1e-5, rtol=1e-5))

    # Secondary test: odd C / ragged rows exercise the fallback (M, C) path + Pallas masking.
    B2, N2, C2 = 2, 7, 48
    x2 = jax.random.normal(kx, (B2, N2, C2), jnp.float32)
    w2 = jax.random.normal(kw, (C2,), jnp.float32)
    b2 = jax.random.normal(kb, (C2,), jnp.float32)
    y2 = jax.jit(dwconv)(x2, w2, b2)
    jax.block_until_ready(y2)
    ref2 = x2 * w2[None, None, :] + b2[None, None, :]
    assert bool(jnp.allclose(y2, ref2, atol=1e-5, rtol=1e-5))

    print("KERNEL_OK")
</pallas_src>

<mosaic_0001>
module attributes {stable_mosaic.version = 11 : i64} {
  func.func @_dwconv_kernel(%arg0: i32, %arg1: memref<16x128xf32, #tpu.memory_space<vmem>>, %arg2: memref<1x128xf32, #tpu.memory_space<vmem>>, %arg3: memref<1x128xf32, #tpu.memory_space<vmem>>, %arg4: memref<16x128xf32, #tpu.memory_space<vmem>>) attributes {dimension_semantics = [#tpu.dimension_semantics<parallel>], iteration_bounds = array<i64: 2>, scalar_prefetch = 0 : i64, scratch_operands = 0 : i64, tpu.core_type = #tpu.core_type<tc>, window_params = [{transform_indices = @transform_0, window_bounds = array<i64: 16, 128>}, {pipeline_mode = #tpu.pipeline_mode<synchronous>, transform_indices = @transform_1, window_bounds = array<i64: 1, 128>}, {pipeline_mode = #tpu.pipeline_mode<synchronous>, transform_indices = @transform_2, window_bounds = array<i64: 1, 128>}, {transform_indices = @transform_3, window_bounds = array<i64: 16, 128>}]} {
    %c0 = arith.constant 0 : index
    %c0_0 = arith.constant 0 : index
    %0 = vector.load %arg1[%c0, %c0_0] : memref<16x128xf32, #tpu.memory_space<vmem>>, vector<16x128xf32>
    %c0_1 = arith.constant 0 : index
    %c0_2 = arith.constant 0 : index
    %1 = vector.load %arg2[%c0_1, %c0_2] : memref<1x128xf32, #tpu.memory_space<vmem>>, vector<1x128xf32>
    %2 = vector.broadcast %1 : vector<1x128xf32> to vector<16x128xf32>
    %3 = arith.mulf %0, %2 : vector<16x128xf32>
    %c0_3 = arith.constant 0 : index
    %c0_4 = arith.constant 0 : index
    %4 = vector.load %arg3[%c0_3, %c0_4] : memref<1x128xf32, #tpu.memory_space<vmem>>, vector<1x128xf32>
    %5 = vector.broadcast %4 : vector<1x128xf32> to vector<16x128xf32>
    %6 = arith.addf %3, %5 : vector<16x128xf32>
    %c0_5 = arith.constant 0 : index
    %c0_6 = arith.constant 0 : index
    %7 = vector.load %arg4[%c0_5, %c0_6] : memref<16x128xf32, #tpu.memory_space<vmem>>, vector<16x128xf32>
    tpu.vector_store %arg4[%c0_5, %c0_6], %6 {strides = array<i32>} : memref<16x128xf32, #tpu.memory_space<vmem>>, vector<16x128xf32>,
    return
  }
  func.func @transform_0(%arg0: i32) -> (i32, i32) {
    %c0_i32 = arith.constant 0 : i32
    %c0_i32_0 = arith.constant 0 : i32
    return %arg0, %c0_i32 : i32, i32
  }
  func.func @transform_1(%arg0: i32) -> (i32, i32) {
    %c0_i32 = arith.constant 0 : i32
    %c0_i32_0 = arith.constant 0 : i32
    %c0_i32_1 = arith.constant 0 : i32
    return %c0_i32, %c0_i32_0 : i32, i32
  }
  func.func @transform_2(%arg0: i32) -> (i32, i32) {
    %c0_i32 = arith.constant 0 : i32
    %c0_i32_0 = arith.constant 0 : i32
    %c0_i32_1 = arith.constant 0 : i32
    return %c0_i32, %c0_i32_0 : i32, i32
  }
  func.func @transform_3(%arg0: i32) -> (i32, i32) {
    %c0_i32 = arith.constant 0 : i32
    %c0_i32_0 = arith.constant 0 : i32
    return %arg0, %c0_i32 : i32, i32
  }
}

</mosaic_0001>

<bundles_post_ra>
// kernel: tile.14
= control target key start
LH: loop header
LB: loop body
LE: loop exit
PB: predicated region body
PF: predicated region fallthrough
CT: control target
= control target key end

     0   :  { %vm8_vm0 = vcmask 261120   ;;  %s40_s8 = smov 32   ;;  %s41_s9 = smov 64   ;;  %vm14_vm1 = vcmask 1048320   ;;  %vm20_vm2 = vcmask 785920   ;;  %vm26_vm3 = vcmask 523520   ;;  %s58_s0 = inlined_call_operand.vmem [shape: f32[4,32], index: 0, kind: input, shape index: {}]   ;;  %s59_s1 = inlined_call_operand.vmem [shape: f32[1,128], index: 1, kind: output, shape index: {}]  }
   0x1   :  { %v5_v0 = vld [vmem:[%s58_s0] sm:$0xf]  ;;  %s39_s0 = smov 96  }
   0x2   :  { %6 = vst [vmem:[#allocation1] sm:$0xf] %v5_v0 }
   0x9   :  { %v11_v1 = vld [vmem:[#allocation1 + $0x3] sm:$0x1]   ;;  %v23_v2 = vld [vmem:[#allocation1 + $0x1] sm:$0x1]   ;;  %v7_v3 = vld [vmem:[#allocation1] sm:$0x1]  }
   0xa   :  { %12 = vrot.lane.b32.xlu0 %v11_v1, %s39_s0  ;;  %24 = vrot.lane.b32.xlu1 %v23_v2, %s40_s8  ;;  %v17_v4 = vld [vmem:[#allocation1 + $0x2] sm:$0x1]   ;;  %9 = vst.msk [vmem:[#allocation0] sm:$0x1] %vm8_vm0, %v7_v3  }
   0xe   :  { %18 = vrot.lane.b32.xlu0 %v17_v4, %s41_s9 }
  0x7c   :  { %v13_v5 = vpop.permute.xlu0 %12   ;;  %v25_v6 = vpop.permute.xlu1 %24  }
  0x7d   :  { %15 = vst.msk [vmem:[#allocation0] sm:$0x1] %vm14_vm1, %v13_v5  }
  0x80   :  { %v19_v7 = vpop.permute.xlu0 %18  }
  0x81   :  { %21 = vst.msk [vmem:[#allocation0] sm:$0x1] %vm20_vm2, %v19_v7  }
  0x82   :  { %27 = vst.msk [vmem:[#allocation0] sm:$0x1] %vm26_vm3, %v25_v6  }
  0x89   :  { %v32_v8 = vld [vmem:[#allocation0] sm:$0x1] }
  0x8a   :  { %35 = vst [vmem:[%s59_s1] sm:$0x1] %v32_v8 }

// kernel: tile.13
= control target key start
LH: loop header
LB: loop body
LE: loop exit
PB: predicated region body
PF: predicated region fallthrough
CT: control target
= control target key end

     0   :  { %s22_s0 = inlined_call_operand.vmem [shape: f32[32], index: 0, kind: input, shape index: {}]   ;;  %s23_s1 = inlined_call_operand.vmem [shape: f32[4,32], index: 1, kind: output, shape index: {}]  }
   0x1   :  { %v4_v0 = vld [vmem:[%s22_s0] ss:$0 sm:$0xff] }
   0x2   :  { %5 = vst [vmem:[%s23_s1] sm:$0xf] %v4_v0 }

// kernel: dwconv.1
= control target key start
LH: loop header
LB: loop body
LE: loop exit
PB: predicated region body
PF: predicated region fallthrough
CT: control target
= control target key end

     0   :  { %s277_s12 = smov 0   ;;  %s313_s0 = inlined_call_operand.vmem [shape: f32[32,128], index: 0, kind: input, shape index: {}]   ;;  %s314_s1 = inlined_call_operand.vmem [shape: f32[1,128], index: 1, kind: input, shape index: {}]   ;;  %s315_s2 = inlined_call_operand.vmem [shape: f32[1,128], index: 2, kind: input, shape index: {}]   ;;  %s316_s3 = inlined_call_operand.vmem [shape: f32[32,128], index: 3, kind: output, shape index: {}]  }
   0x1 LB: > { %s252_s13 = sadd.s32 4294967295, %s279_s12   ;;  %p256_p0 = scmp.ge.s32.totalorder %s279_s12, 1  ;;  %s279_s12 = sphi %s277_s12, %s13_s12  }
   0x2   : > { %p138_p1 = scmp.lt.s32.totalorder %s279_s12, 3 }
   0x4   : > { %p139_p2 = pnand %p256_p0, %p138_p1 }
   0x5   : > { %s257_s14 = sshll.u32 (!%p139_p2), %s252_s13, 1 }
   0x6   : > { %142 = sbr.rel (%p139_p2) target bundleno = 20 (0x14), region = 32  ;;  %p163_p3 = scmp.lt.s32.totalorder (!%p139_p2), %s257_s14, 3 }
   0xb   : > { %s318_s14 = smov (!%p163_p3, %s257_s14), 3  ;;  %v261_v0 = vld [vmem:[%s314_s1] ss:$0 sm:$0xff] }
   0xc   : > { %s258_s15 = sshll.u32 %s318_s14, 3  ;;  %v262_v3 = vld [vmem:[%s315_s2] ss:$0 sm:$0xff] }
   0xd   : > { %s166_s20 = scalar_lea.vmem %s313_s0, %s258_s15  ;;  %s172_s25 = scalar_lea.vmem %s316_s3, %s258_s15 }
   0xe   : > { %v174_v1 = vld [vmem:[%s166_s20] sm:$0xff]  ;;  %v175_v2 = vld [vmem:[%s166_s20 + $0x8] sm:$0xff] }
   0xf   : > { %v183_v4 = vmul.f32 %v261_v0, %v174_v1  ;;  %v184_v5 = vmul.f32 %v261_v0, %v175_v2 }
  0x11   : > { %v192_v6 = vadd.f32 %v262_v3, %v183_v4  ;;  %v193_v7 = vadd.f32 %v262_v3, %v184_v5 }
  0x13   : > { %194 = vst [vmem:[%s172_s25] sm:$0xff] %v192_v6  ;;  %195 = vst [vmem:[%s172_s25 + $0x8] sm:$0xff] %v193_v7 }
  0x14 PF: > { %s13_s12 = sadd.s32 1, %s279_s12  }
  0x15   : > { %p10_p4 = scmp.ge.s32.totalorder %s13_s12, 4  }
  0x17   :  { %12 = sbr.rel (!%p10_p4) target bundleno = 1 (0x1), region = 62 }

</bundles_post_ra>
